<compile_context>
chip_gen: v7x
topology: tpu7x:2x2x1
jax: 0.10.0
libtpu: 0.0.40
codegen_flags: <defaults>
</compile_context>

<pallas_src>
import jax
import jax.numpy as jnp
from jax.experimental import pallas as pl
from jax.experimental.pallas import tpu as pltpu


def ranknet_kernel(scalars_ref, xi_ref, xj_ref, wp_ref, out_ref):
    """Fused RankNet pairwise forward.

    scalars_ref : (2,)     f32 SMEM   [sigma, bo]
    xi_ref      : (B, D)   f32 VMEM
    xj_ref      : (B, D)   f32 VMEM
    wp_ref      : (D+2, H) f32 VMEM   rows [0:D] = wi, row D = bi, row D+1 = wo^T
    out_ref     : (B, 1)   f32 VMEM   sigmoid(sigma * (s_i - s_j))
    """
    d_in = xi_ref.shape[1]

    # Static row views of the packed parameter slab (static slices -> cheap).
    wi_rows = [wp_ref[d:d + 1, :] for d in range(d_in)]      # D x (1, H)
    bi_row = wp_ref[d_in:d_in + 1, :]                        # (1, H)
    wo_row = wp_ref[d_in + 1:d_in + 2, :]                    # (1, H) == wo^T
    sigma = scalars_ref[0]
    bo = scalars_ref[1]

    def score(x):                                            # x: (B, D)
        # Layer 1: (B,D)@(D,H)+bi as D broadcast-FMAs on the VPU.  At D=2 an
        # MXU matmul would pad K up to 128 (v5e) / 256 (v6e, v7x) for 2 useful
        # columns.  Switch to jnp.dot(x, wi, preferred_element_type=jnp.float32)
        # once D >~ 8 or H >= 128 (crossover is earlier on v5e's 128x128 MXU).
        h_pre = bi_row
        for d in range(d_in):                                # static unroll, D=2
            h_pre = h_pre + x[:, d:d + 1] * wi_rows[d]       # (B,1)*(1,H)->(B,H)
        # Hidden sigmoid: exp and reciprocal both go to the EUP slot, keeping
        # the divide off the VALU slot that the FMA loop above already loads.
        h = pl.reciprocal(1.0 + jnp.exp(-h_pre), approx=True)
        # Layer 2: (B,H)@(H,1)+bo as VPU multiply + XLU lane reduce (N=1, so
        # no single-column MXU push/pop).
        s_pre = jnp.sum(h * wo_row, axis=-1, keepdims=True) + bo   # (B, 1)
        return jax.nn.sigmoid(s_pre)                         # exact final form

    si = score(xi_ref[...])
    sj = score(xj_ref[...])
    out_ref[...] = jax.nn.sigmoid(sigma * (si - sj)).astype(out_ref.dtype)


def prepare_params(wi, bi, wo, bo, sigma):
    """One-time parameter packing/layout prep (outside the hot path)."""
    assert wo.shape[1] == 1, "kernel is specialized to output_size == 1"
    d_in, hidden = wi.shape
    packed = jnp.concatenate(
        [
            wi.astype(jnp.float32),                       # rows 0..D-1 : wi
            bi.reshape(1, hidden).astype(jnp.float32),    # row D       : bi
            wo.reshape(1, hidden).astype(jnp.float32),    # row D+1     : wo^T
        ],
        axis=0,
    )                                                     # (D+2, H)
    scalars = jnp.concatenate(
        [sigma.reshape(1), bo.reshape(1)]
    ).astype(jnp.float32)                                 # (2,) = [sigma, bo]
    return dict(packed=packed, scalars=scalars)


@jax.jit
def ranknet_forward(xi, xj, params):
    """RankNet pairwise forward via a single fused Pallas kernel."""
    B = xi.shape[0]
    vmem = pl.BlockSpec(memory_space=pltpu.MemorySpace.VMEM)
    smem = pl.BlockSpec(memory_space=pltpu.MemorySpace.SMEM)
    # No grid: everything fits in a few vregs at these sizes, and on v5e/v6e
    # (single TensorCore) a grid is just a serial loop with ~0.35 us/step of
    # overhead.  Scale-up plan: when batch grows, add a batch grid axis with
    # compiler_params=pltpu.CompilerParams(dimension_semantics=("parallel",))
    # (shards across v7x's 2 TCs), pin the packed weights with a constant
    # index_map, keep per-core tiles a few MiB (v7x VMEM is 64 MiB), and emit
    # the scores lane-dense (multiples of 128 along the last axis) to avoid
    # masked vst.msk partial stores.  Many pair-batches per step should be
    # stacked into one invocation rather than calling this wrapper per batch.
    return pl.pallas_call(
        ranknet_kernel,
        out_shape=jax.ShapeDtypeStruct((B, 1), jnp.float32),
        in_specs=[smem, vmem, vmem, vmem],
        out_specs=vmem,
    )(params["scalars"], xi, xj, params["packed"])


def ranknet_reference(xi, xj, wi, bi, wo, bo, sigma):
    def single(x):
        h = jax.nn.sigmoid(x @ wi + bi)
        return jax.nn.sigmoid(h @ wo + bo)
    return jax.nn.sigmoid(sigma * (single(xi) - single(xj)))


if __name__ == "__main__":
    # Small shapes consistent with the Moons RankNet module:
    # input_size=2 (2-D moons points), hidden_size=32, output_size=1, batch=8.
    input_size, hidden_size, output_size, batch = 2, 32, 1, 8

    key = jax.random.PRNGKey(0)
    k_wi, k_wo, k_bi, k_bo, k_s, k_xi, k_xj = jax.random.split(key, 7)

    # Deterministic "randn"-style parameter init (matches torch.randn shapes).
    wi = jax.random.normal(k_wi, (input_size, hidden_size), dtype=jnp.float32)
    wo = jax.random.normal(k_wo, (hidden_size, output_size), dtype=jnp.float32)
    bi = jax.random.normal(k_bi, (hidden_size,), dtype=jnp.float32)
    bo = jax.random.normal(k_bo, (output_size,), dtype=jnp.float32)
    sigma = jax.random.normal(k_s, (1,), dtype=jnp.float32)

    xi = jax.random.normal(k_xi, (batch, input_size), dtype=jnp.float32)
    xj = jax.random.normal(k_xj, (batch, input_size), dtype=jnp.float32)

    params = prepare_params(wi, bi, wo, bo, sigma)   # one-time layout prep

    out = jax.block_until_ready(ranknet_forward(xi, xj, params))
    ref = ranknet_reference(xi, xj, wi, bi, wo, bo, sigma)

    assert out.shape == (batch, output_size)
    # Tolerance is slightly looser than exact: the hidden sigmoid uses the EUP
    # approximate reciprocal (per perf review); after two further sigmoids the
    # residual error is well under 1e-3.
    assert jnp.allclose(out, ref, atol=2e-3, rtol=1e-3), (out, ref)

    print("KERNEL_OK")
</pallas_src>

<mosaic_0001>
module attributes {stable_mosaic.version = 11 : i64} {
  func.func @ranknet_kernel(%arg0: memref<2xf32, #tpu.memory_space<smem>>, %arg1: memref<8x2xf32, #tpu.memory_space<vmem>>, %arg2: memref<8x2xf32, #tpu.memory_space<vmem>>, %arg3: memref<4x32xf32, #tpu.memory_space<vmem>>, %arg4: memref<8x1xf32, #tpu.memory_space<vmem>>) attributes {dimension_semantics = [], scalar_prefetch = 0 : i64, scratch_operands = 0 : i64, tpu.core_type = #tpu.core_type<tc>} {
    %c0 = arith.constant 0 : index
    %c0_0 = arith.constant 0 : index
    %0 = vector.load %arg3[%c0, %c0_0] : memref<4x32xf32, #tpu.memory_space<vmem>>, vector<1x32xf32>
    %c1 = arith.constant 1 : index
    %c0_1 = arith.constant 0 : index
    %1 = vector.load %arg3[%c1, %c0_1] : memref<4x32xf32, #tpu.memory_space<vmem>>, vector<1x32xf32>
    %c2 = arith.constant 2 : index
    %c0_2 = arith.constant 0 : index
    %2 = vector.load %arg3[%c2, %c0_2] : memref<4x32xf32, #tpu.memory_space<vmem>>, vector<1x32xf32>
    %c3 = arith.constant 3 : index
    %c0_3 = arith.constant 0 : index
    %3 = vector.load %arg3[%c3, %c0_3] : memref<4x32xf32, #tpu.memory_space<vmem>>, vector<1x32xf32>
    %c0_4 = arith.constant 0 : index
    %4 = memref.load %arg0[%c0_4] : memref<2xf32, #tpu.memory_space<smem>>
    %c1_5 = arith.constant 1 : index
    %5 = memref.load %arg0[%c1_5] : memref<2xf32, #tpu.memory_space<smem>>
    %c0_6 = arith.constant 0 : index
    %c0_7 = arith.constant 0 : index
    %6 = vector.load %arg1[%c0_6, %c0_7] : memref<8x2xf32, #tpu.memory_space<vmem>>, vector<8x2xf32>
    %7 = vector.extract_strided_slice %6 {offsets = [0, 0], sizes = [8, 1], strides = [1, 1]} : vector<8x2xf32> to vector<8x1xf32>
    %8 = vector.broadcast %7 : vector<8x1xf32> to vector<8x32xf32>
    %9 = vector.broadcast %0 : vector<1x32xf32> to vector<8x32xf32>
    %10 = arith.mulf %8, %9 : vector<8x32xf32>
    %11 = vector.broadcast %2 : vector<1x32xf32> to vector<8x32xf32>
    %12 = arith.addf %11, %10 : vector<8x32xf32>
    %13 = vector.extract_strided_slice %6 {offsets = [0, 1], sizes = [8, 1], strides = [1, 1]} : vector<8x2xf32> to vector<8x1xf32>
    %14 = vector.broadcast %13 : vector<8x1xf32> to vector<8x32xf32>
    %15 = vector.broadcast %1 : vector<1x32xf32> to vector<8x32xf32>
    %16 = arith.mulf %14, %15 : vector<8x32xf32>
    %17 = arith.addf %12, %16 : vector<8x32xf32>
    %cst = arith.constant 0.000000e+00 : f32
    %18 = vector.broadcast %cst : f32 to vector<8x32xf32>
    %19 = arith.subf %18, %17 : vector<8x32xf32>
    %20 = math.exp %19 : vector<8x32xf32>
    %cst_8 = arith.constant 1.000000e+00 : f32
    %21 = vector.broadcast %cst_8 : f32 to vector<8x32xf32>
    %22 = arith.addf %21, %20 : vector<8x32xf32>
    %23 = tpu.reciprocal %22 {approx = true} : vector<8x32xf32> -> vector<8x32xf32>
    %24 = vector.broadcast %3 : vector<1x32xf32> to vector<8x32xf32>
    %25 = arith.mulf %23, %24 : vector<8x32xf32>
    %cst_9 = arith.constant dense<0.000000e+00> : vector<8xf32>
    %26 = vector.multi_reduction <add>, %25, %cst_9 [1] : vector<8x32xf32> to vector<8xf32>
    %27 = vector.shape_cast %26 : vector<8xf32> to vector<8x1xf32>
    %28 = vector.broadcast %5 : f32 to vector<8x1xf32>
    %29 = arith.addf %27, %28 : vector<8x1xf32>
    %30 = arith.negf %29 : vector<8x1xf32>
    %31 = math.exp %30 : vector<8x1xf32>
    %cst_10 = arith.constant 1.000000e+00 : f32
    %32 = vector.broadcast %cst_10 : f32 to vector<8x1xf32>
    %33 = arith.addf %32, %31 : vector<8x1xf32>
    %34 = arith.divf %32, %33 : vector<8x1xf32>
    %c0_11 = arith.constant 0 : index
    %c0_12 = arith.constant 0 : index
    %35 = vector.load %arg2[%c0_11, %c0_12] : memref<8x2xf32, #tpu.memory_space<vmem>>, vector<8x2xf32>
    %36 = vector.extract_strided_slice %35 {offsets = [0, 0], sizes = [8, 1], strides = [1, 1]} : vector<8x2xf32> to vector<8x1xf32>
    %37 = vector.broadcast %36 : vector<8x1xf32> to vector<8x32xf32>
    %38 = vector.broadcast %0 : vector<1x32xf32> to vector<8x32xf32>
    %39 = arith.mulf %37, %38 : vector<8x32xf32>
    %40 = vector.broadcast %2 : vector<1x32xf32> to vector<8x32xf32>
    %41 = arith.addf %40, %39 : vector<8x32xf32>
    %42 = vector.extract_strided_slice %35 {offsets = [0, 1], sizes = [8, 1], strides = [1, 1]} : vector<8x2xf32> to vector<8x1xf32>
    %43 = vector.broadcast %42 : vector<8x1xf32> to vector<8x32xf32>
    %44 = vector.broadcast %1 : vector<1x32xf32> to vector<8x32xf32>
    %45 = arith.mulf %43, %44 : vector<8x32xf32>
    %46 = arith.addf %41, %45 : vector<8x32xf32>
    %cst_13 = arith.constant 0.000000e+00 : f32
    %47 = vector.broadcast %cst_13 : f32 to vector<8x32xf32>
    %48 = arith.subf %47, %46 : vector<8x32xf32>
    %49 = math.exp %48 : vector<8x32xf32>
    %cst_14 = arith.constant 1.000000e+00 : f32
    %50 = vector.broadcast %cst_14 : f32 to vector<8x32xf32>
    %51 = arith.addf %50, %49 : vector<8x32xf32>
    %52 = tpu.reciprocal %51 {approx = true} : vector<8x32xf32> -> vector<8x32xf32>
    %53 = vector.broadcast %3 : vector<1x32xf32> to vector<8x32xf32>
    %54 = arith.mulf %52, %53 : vector<8x32xf32>
    %cst_15 = arith.constant dense<0.000000e+00> : vector<8xf32>
    %55 = vector.multi_reduction <add>, %54, %cst_15 [1] : vector<8x32xf32> to vector<8xf32>
    %56 = vector.shape_cast %55 : vector<8xf32> to vector<8x1xf32>
    %57 = vector.broadcast %5 : f32 to vector<8x1xf32>
    %58 = arith.addf %56, %57 : vector<8x1xf32>
    %59 = arith.negf %58 : vector<8x1xf32>
    %60 = math.exp %59 : vector<8x1xf32>
    %cst_16 = arith.constant 1.000000e+00 : f32
    %61 = vector.broadcast %cst_16 : f32 to vector<8x1xf32>
    %62 = arith.addf %61, %60 : vector<8x1xf32>
    %63 = arith.divf %61, %62 : vector<8x1xf32>
    %64 = arith.subf %34, %63 : vector<8x1xf32>
    %65 = vector.broadcast %4 : f32 to vector<8x1xf32>
    %66 = arith.mulf %65, %64 : vector<8x1xf32>
    %67 = arith.negf %66 : vector<8x1xf32>
    %68 = math.exp %67 : vector<8x1xf32>
    %cst_17 = arith.constant 1.000000e+00 : f32
    %69 = vector.broadcast %cst_17 : f32 to vector<8x1xf32>
    %70 = arith.addf %69, %68 : vector<8x1xf32>
    %71 = arith.divf %69, %70 : vector<8x1xf32>
    %c0_18 = arith.constant 0 : index
    %c0_19 = arith.constant 0 : index
    %72 = vector.load %arg4[%c0_18, %c0_19] : memref<8x1xf32, #tpu.memory_space<vmem>>, vector<8x1xf32>
    tpu.vector_store %arg4[%c0_18, %c0_19], %71 {strides = array<i32>} : memref<8x1xf32, #tpu.memory_space<vmem>>, vector<8x1xf32>,
    return
  }
}

</mosaic_0001>

<bundles_post_ra>
// kernel: ranknet_forward.1
= control target key start
LH: loop header
LB: loop body
LE: loop exit
PB: predicated region body
PF: predicated region fallthrough
CT: control target
= control target key end

     0   :  { %9 = vsyncpa [#allocation3], 0  ;;  %s230_s0 = inlined_call_operand.vmem [shape: f32[2], index: 0, kind: input, shape index: {}]   ;;  %s231_s1 = inlined_call_operand.vmem [shape: f32[8,2], index: 1, kind: input, shape index: {}]   ;;  %s232_s2 = inlined_call_operand.vmem [shape: f32[8,2], index: 2, kind: input, shape index: {}]   ;;  %s233_s3 = inlined_call_operand.vmem [shape: f32[4,32], index: 3, kind: input, shape index: {}]   ;;  %s234_s4 = inlined_call_operand.vmem [shape: f32[8,1], index: 4, kind: output, shape index: {}]  }
   0x1   :  { %s16_s17 = sshll.u32 %s230_s0, 4  ;;  %s17_s17 = int_to_ptr.vmem [resolvable:$true] %s16_s17 }
   0x2   :  { %s164_s18 = scalar_lea.vmem %s17_s17, 16  ;;  %p169_p1 = scmp.lt.s32.totalorder %s17_s17, %s17_s17 }
   0x3   :  { %p165_p0 = scmp.ne.s32.totalorder %s17_s17, %s164_s18  ;;  %p170_p2 = scmp.lt.s32.totalorder %s164_s18, %s164_s18 }
   0x5   :  { %p171_p3 = por %p170_p2, %p169_p1 }
   0x7   :  { %p172_p4 = pnand %p171_p3, %p165_p0 }
   0x9   :  { %175 = shalt.err (!%p172_p4)
}
   0xa   :  { %s178_s19 = smov [#allocation2]  }
   0xb   :  { %19 = dma.vmem_to_smem %s17_s17, 16, %s178_s19, [#allocation3]  }
   0xc   :  { %176 = dma.done.wait [#allocation3], 16  }
   0xd   :  { %177 = vsyncadd [#allocation3], 4294967280 }
   0xe   :  { %29 = sfence }
   0xf   :  { %v36_v0 = vld [vmem:[%s231_s1] sm:$0xff]  ;;  %v179_v1 = vmov 1   ;;  %v180_v2 = vmov 0   ;;  %vm72_vm0 = vcmask 261120   ;;  %s130_s29 = sld [smem:[#allocation2 + $0x1]]  ;;  %vm123_vm1 = vcmask 7168  }
  0x10   :  { %142 = vset.pattern.permute.xlu1 %v179_v1  ;;  %141 = vset.pattern.permute.xlu0 %v180_v2  ;;  %v84_v3 = vld [vmem:[%s232_s2] sm:$0xff] }
  0x11   :  { %53 = vperm.xlu1 %142, %v36_v0   ;;  %39 = vperm.xlu0 %141, %v36_v0   ;;  %v133_v4 = vld [vmem:[%s233_s3 + $0x1] ss:$0 sm:$0xff]  ;;  %v131_v5 = vld [vmem:[%s233_s3] ss:$0 sm:$0xff]  ;;  %v132_v8 = vld [vmem:[%s233_s3 + $0x2] ss:$0 sm:$0xff] }
  0x12   :  { %v134_v27 = vld [vmem:[%s233_s3 + $0x3] ss:$0 sm:$0xff]  ;;  %s34_s3 = sld [smem:[#allocation2]] }
  0x15   :  { %93 = vperm.xlu1 %142, %v84_v3   ;;  %87 = vperm.xlu0 %141, %v84_v3   ;;  %v76_v34 = vstv %s130_s29 }
  0x18   :  { %v115_v47 = vstv %s34_s3 }
  0x19   :  { %143 = vset.pattern.permute.xlu0 %v179_v1 }
  0x90   :  { %v54_v6 = vpop.permute.xlu1 %53  ;;  %v40_v7 = vpop.permute.xlu0 %39 }
  0x91   :  { %v60_v9 = vmul.f32 %v133_v4, %v54_v6  ;;  %v46_v10 = vmul.f32 %v131_v5, %v40_v7 }
  0x93   :  { %v51_v11 = vadd.f32 %v132_v8, %v46_v10 }
  0x94   :  { %v94_v12 = vpop.permute.xlu1 %93  ;;  %v88_v13 = vpop.permute.xlu0 %87 }
  0x95   :  { %v61_v14 = vadd.f32 %v60_v9, %v51_v11  ;;  %v90_v15 = vmul.f32 %v131_v5, %v88_v13  ;;  %v96_v17 = vmul.f32 %v133_v4, %v94_v12 }
  0x97   :  { %v62_v16 = vsub.f32 0.0, %v61_v14  ;;  %v91_v18 = vadd.f32 %v132_v8, %v90_v15 }
  0x99   :  { %v63_v19 = vmul.f32 1.442695, %v62_v16  ;;  %v97_v20 = vadd.f32 %v96_v17, %v91_v18 }
  0x9b   :  { %144 = vpow2.f32 %v63_v19  ;;  %v98_v21 = vsub.f32 0.0, %v97_v20 }
  0x9d   :  { %v99_v22 = vmul.f32 1.442695, %v98_v21 }
  0x9f   :  { %146 = vpow2.f32 %v99_v22 }
  0xa5   :  { %v145_v23 = vpop.eup %144 }
  0xa6   :  { %v65_v24 = vadd.f32 1.0, %v145_v23 }
  0xa8   :  { %148 = vrcp.f32 %v65_v24 }
  0xa9   :  { %v147_v25 = vpop.eup %146 }
  0xaa   :  { %v101_v26 = vadd.f32 1.0, %v147_v25 }
  0xac   :  { %150 = vrcp.f32 %v101_v26 }
  0xb2   :  { %v149_v28 = vpop.eup %148 }
  0xb3   :  { %v71_v29 = vmul.f32 %v149_v28, %v134_v27 }
  0xb5   :  { %v73_v30 = vsel %vm72_vm0, %v71_v29, 0.0 }
  0xb6   :  { %v151_v31 = vpop.eup %150  ;;  %74 = vadd.xlane.f32.xlu0 %v73_v30 }
  0xb7   :  { %v103_v32 = vmul.f32 %v151_v31, %v134_v27 }
  0xb9   :  { %v104_v33 = vsel %vm72_vm0, %v103_v32, 0.0 }
  0xba   :  { %105 = vadd.xlane.f32.xlu1 %v104_v33 }
 0x143   :  { %v75_v35 = vpop.xlane.xlu0 %74 }
 0x144   :  { %v77_v36 = vadd.f32 %v76_v34, %v75_v35 }
 0x146   :  { %v135_v37 = vmul.f32 -1.442695, %v77_v36 }
 0x147   :  { %v106_v38 = vpop.xlane.xlu1 %105 }
 0x148   :  { %152 = vpow2.f32 %v135_v37  ;;  %v107_v39 = vadd.f32 %v106_v38, %v76_v34 }
 0x14a   :  { %v136_v40 = vmul.f32 -1.442695, %v107_v39 }
 0x14c   :  { %154 = vpow2.f32 %v136_v40 }
 0x152   :  { %v153_v41 = vpop.eup %152 }
 0x153   :  { %v81_v42 = vadd.f32 1.0, %v153_v41 }
 0x155   :  { %156 = vrcp.f32 %v81_v42 }
 0x156   :  { %v155_v43 = vpop.eup %154 }
 0x157   :  { %v111_v44 = vadd.f32 1.0, %v155_v43 }
 0x159   :  { %158 = vrcp.f32 %v111_v44 }
 0x15f   :  { %v157_v45 = vpop.eup %156 }
 0x163   :  { %v159_v46 = vpop.eup %158 }
 0x164   :  { %v114_v48 = vsub.f32 %v157_v45, %v159_v46 }
 0x166   :  { %v116_v49 = vmul.f32 %v115_v47, %v114_v48 }
 0x168   :  { %v137_v50 = vmul.f32 -1.442695, %v116_v49 }
 0x16a   :  { %160 = vpow2.f32 %v137_v50 }
 0x174   :  { %v161_v51 = vpop.eup %160 }
 0x175   :  { %v120_v52 = vadd.f32 1.0, %v161_v51 }
 0x177   :  { %162 = vrcp.f32 %v120_v52 }
 0x181   :  { %v163_v53 = vpop.eup %162 }
 0x182   :  { %124 = vst.msk [vmem:[%s234_s4] sm:$0xff] %vm123_vm1, %v163_v53 }
 0x183   :  { %129 = vsyncpa [#allocation3], 1 }

</bundles_post_ra>
